<compile_context>
chip_gen: v5e
topology: v5e:2x2
jax: 0.10.0
libtpu: 0.0.40
codegen_flags: <defaults>
</compile_context>

<pallas_src>
import functools

import jax
import jax.numpy as jnp
from jax import lax
from jax.experimental import pallas as pl
from jax.experimental.pallas import tpu as pltpu

_LANE = 128
_TARGET_BLOCK_BYTES = 4 * 1024 * 1024   # ~4 MiB per pipelined block (sweet spot on v5e/v6e/v7x)


def _fbank_aug_kernel(params_ref, x_ref, o_ref, *, batch_tile):
    """SpecAugment-style time + freq rectangular masks, `batch_tile` items per grid step.

    params_ref : SMEM int32, flat (4 * B_pad,), [t_pos, t_len, f_pos, f_len] per batch item
                 (1-D layout avoids the 2-D SMEM [ceil(R/8)*8, 128]-word padding blowup).
    x_ref/o_ref: VMEM (batch_tile, F, T_pad) tile of the current batch group.
    """
    _, Fdim, Tdim = x_ref.shape
    base = pl.program_id(0) * batch_tile          # global batch offset of this tile

    # Hoist loop-invariant iotas (JAX does not CSE broadcast_in_dim inside loops).
    # Keep them narrow ((1, T) row / (F, 1) column); the broadcast to (F, T) happens
    # once inside jnp.where, so per-element VPU work stays tiny (free filler anyway:
    # this kernel is pure HBM streaming).
    t_idx = lax.broadcasted_iota(jnp.int32, (1, Tdim), 1)    # (1, T)
    f_idx = lax.broadcasted_iota(jnp.int32, (Fdim, 1), 0)    # (F, 1)

    def body(i, carry):
        b = base + i                               # global batch index
        t_pos = params_ref[4 * b + 0]
        t_len = params_ref[4 * b + 1]
        f_pos = params_ref[4 * b + 2]
        f_len = params_ref[4 * b + 3]

        # time mask (PyTorch dim=2) then freq mask (dim=1); sequential masked_fill_
        # with zeros == zeroing the union of both rectangles.
        t_mask = (t_idx >= t_pos) & (t_idx < t_pos + t_len)   # (1, T)
        f_mask = (f_idx >= f_pos) & (f_idx < f_pos + f_len)   # (F, 1)
        x = x_ref[i]                                          # (F, T_pad)
        o_ref[i] = jnp.where(t_mask | f_mask, 0.0, x).astype(x.dtype)
        return carry

    lax.fori_loop(0, batch_tile, body, 0, unroll=True)


@jax.jit
def _fbank_aug_call(x, params):
    """x: (B, F, T) float array; params: (B, 4) int32 [t_pos, t_len, f_pos, f_len]."""
    B, F, T = x.shape

    # Lane-dense time axis: pad T to a multiple of 128 (sliced back at the end).
    Tp = pl.cdiv(T, _LANE) * _LANE
    if Tp != T:
        x = jnp.pad(x, ((0, 0), (0, 0), (0, Tp - T)))

    # Multiple batch items per grid step: the kernel is pure HBM streaming, so make
    # each block a few MiB to hide the ~0.35 us per-step overhead, while keeping
    # ~4x block bytes (double-buffered in+out) well under v7x's 64 MiB VMEM.
    item_bytes = F * Tp * jnp.dtype(x.dtype).itemsize
    bt = max(1, _TARGET_BLOCK_BYTES // item_bytes)
    bt = min(bt, B)
    if B >= 2:
        bt = min(bt, -(-B // 2))        # keep grid length >= 2 so both v7x TCs get work
    bt = int(bt)

    # Pad batch to a multiple of bt (padded items get zero-length masks -> identity).
    Bp = pl.cdiv(B, bt) * bt
    if Bp != B:
        x = jnp.pad(x, ((0, Bp - B), (0, 0), (0, 0)))
        params = jnp.pad(params, ((0, Bp - B), (0, 0)))

    params_flat = params.reshape(-1).astype(jnp.int32)   # flat 1-D SMEM table (4 * Bp,)

    block_bytes = bt * item_bytes
    vmem_limit = int(min(48 * 1024 * 1024, max(32 * 1024 * 1024, 5 * block_bytes)))

    kernel = functools.partial(_fbank_aug_kernel, batch_tile=bt)
    out = pl.pallas_call(
        kernel,
        out_shape=jax.ShapeDtypeStruct((Bp, F, Tp), x.dtype),
        grid_spec=pltpu.PrefetchScalarGridSpec(
            num_scalar_prefetch=1,                        # params_flat -> SMEM
            grid=(Bp // bt,),
            in_specs=[pl.BlockSpec((bt, F, Tp), lambda g, params: (g, 0, 0))],
            out_specs=pl.BlockSpec((bt, F, Tp), lambda g, params: (g, 0, 0)),
        ),
        compiler_params=pltpu.CompilerParams(
            dimension_semantics=("parallel",),
            vmem_limit_bytes=vmem_limit,
        ),
    )(params_flat, x)

    # TODO(synk): if callers can donate x, alias it to the output (input_output_aliases)
    # and DMA only the two masked strips (F x t_len and f_len x T) instead of streaming
    # the whole tensor; ~10-20x less HBM traffic for typical fbank shapes.
    if Bp != B or Tp != T:
        out = out[:B, :, :T]
    return out


def _sample_mask_params(key, B, F, T, freq_mask_width=(0, 8), time_mask_width=(0, 10)):
    """Random mask params matching FbankAug's torch.randint draws.

    Traced-safe: the max mask length stays on device (no host sync), so this works
    under an outer jit / vmap / scan.
    """
    k1, k2, k3, k4 = jax.random.split(key, 4)
    # time mask (dim=2)
    t_len = jax.random.randint(k1, (B,), time_mask_width[0], time_mask_width[1])
    t_pos = jax.random.randint(k2, (B,), 0, jnp.maximum(1, T - jnp.max(t_len)))
    # freq mask (dim=1)
    f_len = jax.random.randint(k3, (B,), freq_mask_width[0], freq_mask_width[1])
    f_pos = jax.random.randint(k4, (B,), 0, jnp.maximum(1, F - jnp.max(f_len)))
    return jnp.stack([t_pos, t_len, f_pos, f_len], axis=1).astype(jnp.int32)


def fbank_aug(x, key, freq_mask_width=(0, 8), time_mask_width=(0, 10)):
    """JAX/Pallas equivalent of FbankAug.forward (x: (B, F, T), key: JAX PRNG key)."""
    B, F, T = x.shape
    params = _sample_mask_params(key, B, F, T, freq_mask_width, time_mask_width)
    return _fbank_aug_call(x, params)


def _reference(x, params):
    """Pure-JAX reference of the same masking for correctness checks."""
    B, F, T = x.shape
    t_pos, t_len, f_pos, f_len = (params[:, i][:, None, None] for i in range(4))
    f_idx = jnp.arange(F)[None, :, None]
    t_idx = jnp.arange(T)[None, None, :]
    t_mask = (t_idx >= t_pos) & (t_idx < t_pos + t_len)
    f_mask = (f_idx >= f_pos) & (f_idx < f_pos + f_len)
    return jnp.where(t_mask | f_mask, 0.0, x)


if __name__ == "__main__":
    key = jax.random.PRNGKey(0)
    kx1, ka1, kx2, ka2 = jax.random.split(key, 4)

    # Small fbank-like shapes: (batch, freq_bins, time_frames).
    cases = (
        ((2, 16, 16), kx1, ka1),     # tiny, bt=1 path
        ((4, 80, 200), kx2, ka2),    # exercises T padding (200->256) and bt=2 path
    )
    for (B, F, T), kx, ka in cases:
        x = jax.random.normal(kx, (B, F, T), dtype=jnp.float32)
        out = jax.block_until_ready(fbank_aug(x, ka))
        assert out.shape == x.shape

        # same deterministic params as inside fbank_aug
        params = _sample_mask_params(ka, B, F, T)
        ref = _reference(x, params)
        assert jnp.allclose(out, ref), f"mismatch vs reference at shape {(B, F, T)}"

    print("KERNEL_OK")
</pallas_src>

<mosaic_0001>
module attributes {stable_mosaic.version = 11 : i64} {
  func.func @_fbank_aug_kernel(%arg0: i32, %arg1: memref<8xi32, #tpu.memory_space<smem>>, %arg2: memref<1x16x128xf32, #tpu.memory_space<vmem>>, %arg3: memref<1x16x128xf32, #tpu.memory_space<vmem>>) attributes {dimension_semantics = [#tpu.dimension_semantics<parallel>], iteration_bounds = array<i64: 2>, scalar_prefetch = 1 : i64, scratch_operands = 0 : i64, tpu.core_type = #tpu.core_type<tc>, window_params = [{transform_indices = @transform_0, window_bounds = array<i64: 1, 16, 128>}, {transform_indices = @transform_1, window_bounds = array<i64: 1, 16, 128>}]} {
    %c1_i32 = arith.constant 1 : i32
    %0 = arith.muli %arg0, %c1_i32 : i32
    %1 = tpu.iota {dimensions = array<i32: 1>} : vector<1x128xi32>
    %2 = tpu.iota {dimensions = array<i32: 0>} : vector<16x1xi32>
    %c0_i32 = arith.constant 0 : i32
    %3 = arith.addi %0, %c0_i32 : i32
    %c4_i32 = arith.constant 4 : i32
    %4 = arith.muli %c4_i32, %3 : i32
    %c0_i32_0 = arith.constant 0 : i32
    %5 = arith.addi %4, %c0_i32_0 : i32
    %6 = arith.index_cast %5 : i32 to index
    %7 = memref.load %arg1[%6] : memref<8xi32, #tpu.memory_space<smem>>
    %c4_i32_1 = arith.constant 4 : i32
    %8 = arith.muli %c4_i32_1, %3 : i32
    %c1_i32_2 = arith.constant 1 : i32
    %9 = arith.addi %8, %c1_i32_2 : i32
    %10 = arith.index_cast %9 : i32 to index
    %11 = memref.load %arg1[%10] : memref<8xi32, #tpu.memory_space<smem>>
    %c4_i32_3 = arith.constant 4 : i32
    %12 = arith.muli %c4_i32_3, %3 : i32
    %c2_i32 = arith.constant 2 : i32
    %13 = arith.addi %12, %c2_i32 : i32
    %14 = arith.index_cast %13 : i32 to index
    %15 = memref.load %arg1[%14] : memref<8xi32, #tpu.memory_space<smem>>
    %c4_i32_4 = arith.constant 4 : i32
    %16 = arith.muli %c4_i32_4, %3 : i32
    %c3_i32 = arith.constant 3 : i32
    %17 = arith.addi %16, %c3_i32 : i32
    %18 = arith.index_cast %17 : i32 to index
    %19 = memref.load %arg1[%18] : memref<8xi32, #tpu.memory_space<smem>>
    %20 = vector.broadcast %7 : i32 to vector<1x128xi32>
    %21 = arith.cmpi sge, %1, %20 : vector<1x128xi32>
    %22 = arith.addi %7, %11 : i32
    %23 = vector.broadcast %22 : i32 to vector<1x128xi32>
    %24 = arith.cmpi slt, %1, %23 : vector<1x128xi32>
    %25 = arith.andi %21, %24 : vector<1x128xi1>
    %26 = vector.broadcast %15 : i32 to vector<16x1xi32>
    %27 = arith.cmpi sge, %2, %26 : vector<16x1xi32>
    %28 = arith.addi %15, %19 : i32
    %29 = vector.broadcast %28 : i32 to vector<16x1xi32>
    %30 = arith.cmpi slt, %2, %29 : vector<16x1xi32>
    %31 = arith.andi %27, %30 : vector<16x1xi1>
    %32 = arith.index_cast %c0_i32 : i32 to index
    %c0 = arith.constant 0 : index
    %c0_5 = arith.constant 0 : index
    %33 = vector.load %arg2[%32, %c0, %c0_5] : memref<1x16x128xf32, #tpu.memory_space<vmem>>, vector<1x16x128xf32>
    %34 = vector.shape_cast %33 : vector<1x16x128xf32> to vector<16x128xf32>
    %35 = vector.broadcast %25 : vector<1x128xi1> to vector<16x128xi1>
    %36 = vector.broadcast %31 : vector<16x1xi1> to vector<16x128xi1>
    %37 = arith.ori %35, %36 : vector<16x128xi1>
    %cst = arith.constant 0.000000e+00 : f32
    %38 = vector.broadcast %cst : f32 to vector<16x128xf32>
    %39 = arith.select %37, %38, %34 : vector<16x128xi1>, vector<16x128xf32>
    %40 = arith.index_cast %c0_i32 : i32 to index
    %c0_6 = arith.constant 0 : index
    %c0_7 = arith.constant 0 : index
    %41 = vector.load %arg3[%40, %c0_6, %c0_7] : memref<1x16x128xf32, #tpu.memory_space<vmem>>, vector<1x16x128xf32>
    %42 = vector.shape_cast %41 : vector<1x16x128xf32> to vector<16x128xf32>
    %43 = vector.shape_cast %39 : vector<16x128xf32> to vector<1x16x128xf32>
    tpu.vector_store %arg3[%40, %c0_6, %c0_7], %43 {strides = array<i32>} : memref<1x16x128xf32, #tpu.memory_space<vmem>>, vector<1x16x128xf32>,
    %c1_i32_8 = arith.constant 1 : i32
    return
  }
  func.func @transform_0(%arg0: i32, %arg1: memref<8xi32, #tpu.memory_space<smem>>) -> (i32, i32, i32) {
    %c0_i32 = arith.constant 0 : i32
    %c0_i32_0 = arith.constant 0 : i32
    %c0_i32_1 = arith.constant 0 : i32
    return %arg0, %c0_i32, %c0_i32_0 : i32, i32, i32
  }
  func.func @transform_1(%arg0: i32, %arg1: memref<8xi32, #tpu.memory_space<smem>>) -> (i32, i32, i32) {
    %c0_i32 = arith.constant 0 : i32
    %c0_i32_0 = arith.constant 0 : i32
    %c0_i32_1 = arith.constant 0 : i32
    return %arg0, %c0_i32, %c0_i32_0 : i32, i32, i32
  }
}

</mosaic_0001>

<bundles_post_ra>
// kernel: _fbank_aug_call.1
= control target key start
LH: loop header
LB: loop body
LE: loop exit
PB: predicated region body
PF: predicated region fallthrough
CT: control target
= control target key end

     0   :  { %s379_s12 = smov [#allocation3]   ;;  %s498_s0 = inlined_call_operand.vmem [shape: s32[8], index: 0, kind: input, shape index: {}]   ;;  %s499_s1 = inlined_call_operand.vmem [shape: f32[2,16,128], index: 1, kind: input, shape index: {}]   ;;  %s500_s2 = inlined_call_operand.hbm [shape: f32[2,16,128], index: 2, kind: output, shape index: {}]  }
   0x1   :  { %s8_s11 = sshll.u32 %s498_s0, 4  ;;  %s9_s11 = int_to_ptr.vmem [resolvable:$true] %s8_s11 }
   0x2   :  { %11 = dma.vmem_to_smem %s9_s11, 16, %s379_s12, [#allocation2] }
   0x3   :  { %357 = dma.done.wait [#allocation2], 16 }
   0x4   :  { %358 = vsyncadd [#allocation2], 4294967280 }
   0x5   :  { %14 = sfence }
   0x6   :  { %15 = vsyncpa [#allocation5], 0 }
   0x7   :  { %17 = vsyncpa [#allocation5 + $0x1], 0  ;;  %s400_s13 = smov 0   ;;  %s402_s14 = smov 0  }
   0x8   :  { %s404_s15 = smov 0   ;;  %s406_s16 = smov 0  }
   0x9 LB: > { %s421_s0 = sadd.s32 4294967295, %s377_s16   ;;  %s244_s17 = sadd.s32 4294967294, %s377_s16   ;;  %s377_s16 = sphi %s406_s16, %s508_s16   ;;  %s373_s15 = sphi %s404_s15, %s507_s15   ;;  %s369_s14 = sphi %s402_s14, %s506_s14   ;;  %s365_s13 = sphi %s400_s13, %s505_s13  }
   0xa   : > { %s425_s18 = sadd.s32 1, %s377_s16   ;;  %s56_s19 = sadd.s32 1, %s373_s15 }
   0xb   : > { %s53_s20 = ssub.s32 %s377_s16, %s425_s18  ;;  %p66_p0 = scmp.ne.s32.totalorder %s373_s15, %s369_s14 }
   0xc   : > { %p54_p1 = scmp.eq.s32.totalorder %s53_s20, 0  ;;  %p67_p2 = scmp.eq.s32.totalorder %s421_s0, 1 }
   0xd   : > { %p72_p3 = scmp.ne.s32.totalorder %s369_s14, %s365_s13  ;;  %p73_p4 = scmp.eq.s32.totalorder %s244_s17, 1 }
   0xe   : > { %s436_s21 = scalar_select %p54_p1, %s373_s15, %s56_s19  }
   0xf   : > { %p438_p5 = por %p67_p2, %p66_p0  ;;  %p442_p6 = por %p73_p4, %p72_p3 }
  0x10   : > { %p247_p7 = scmp.ge.s32.totalorder %s377_s16, 1  ;;  %p99_p8 = scmp.lt.s32.totalorder %s377_s16, 3 }
  0x12   : > { %p100_p9 = pnand %p247_p7, %p99_p8 }
  0x13   : > { %p119_p10 = scmp.lt.s32.totalorder (!%p100_p9), %s421_s0, 1  ;;  %s251_s24 = sshll.u32 (!%p100_p9), %s421_s0, 2 }
  0x14   : > { %103 = sbr.rel (%p100_p9) target bundleno = 44 (0x2c), region = 24  ;;  %s130_s25 = sld [smem:[#allocation3 + %s251_s24]] (!%p100_p9) }
  0x15   : > { %s131_s27 = sadd.s32 (!%p100_p9), 1, %s251_s24  ;;  %s133_s28 = sadd.s32 (!%p100_p9), 2, %s251_s24 }
  0x16   : > { %s132_s29 = sld [smem:[#allocation3 + %s131_s27]] (!%p100_p9)  ;;  %s116_s3 = sand.u32 (!%p100_p9), 1, %s369_s14  }
  0x17   : > { %s134_s30 = sld [smem:[#allocation3 + %s133_s28]] (!%p100_p9)  ;;  %s135_s4 = sadd.s32 (!%p100_p9), 3, %s251_s24 }
  0x18   : > { %s136_s5 = sld [smem:[#allocation3 + %s135_s4]] (!%p100_p9)  ;;  %s248_s6 = sshll.u32 (!%p100_p9), %s116_s3, 4 }
  0x19   : > { %s120_s26 = scalar_select %p119_p10, %s421_s0, 1  ;;  %v124_v0 = vlaneseq }
  0x1a   : > { %v137_v3 = vstv %s130_s25  ;;  %s258_s9 = sshll.u32 %s421_s0, 4  ;;  %s118_s0 = scalar_lea.vmem [#allocation4], %s248_s6 }
  0x1b   : > { %v125_v1 = vand.u32 127, %v124_v0  ;;  %v127_v2 = vshrl.u32 %v124_v0, 7  ;;  %s257_s7 = sshll.u32 %s120_s26, 4  ;;  %s178_s24 = scalar_lea.hbm %s500_s2, %s258_s9 }
  0x1c   : > { %s139_s8 = sadd.s32 %s132_s29, %s130_s25  ;;  %s123_s12 = scalar_lea.vmem %s499_s1, %s257_s7 }
  0x1d   : > { %vm138_vm0 = vcmp.ge.s32.totalorder %v125_v1, %v137_v3  ;;  %v140_v4 = vstv %s139_s8  ;;  %v143_v5 = vstv %s134_s30  ;;  %v128_v6 = vadd.s32 8, %v127_v2  ;;  %v152_v9 = vld [vmem:[%s123_s12] sm:$0xff]  ;;  %s179_s25 = sshll.u32 %s118_s0, 4  ;;  %s181_s26 = sshll.u32 %s178_s24, 4  ;;  %v153_v10 = vld [vmem:[%s123_s12 + $0x8] sm:$0xff]  ;;  %s180_s25 = int_to_ptr.vmem [resolvable:$true] %s179_s25  ;;  %s182_s26 = int_to_ptr.hbm [resolvable:$true] %s181_s26 }
  0x1e   : > { %vm141_vm1 = vcmp.lt.s32.totalorder %v125_v1, %v140_v4  ;;  %vm144_vm2 = vcmp.ge.s32.totalorder %v127_v2, %v143_v5  ;;  %s146_s17 = sadd.s32 %s136_s5, %s134_s30  ;;  %s167_s27 = scalar_lea.sflag [#allocation5], %s116_s3 }
  0x1f   : > { %vm461_vm3 = vmand %vm138_vm0, %vm141_vm1  ;;  %v147_v8 = vstv %s146_s17  ;;  %vm145_vm5 = vcmp.ge.s32.totalorder %v128_v6, %v143_v5  ;;  %s327_s28 = sshra.s32 %s182_s26, 4  ;;  %s333_s5 = scalar_lea.hbm %s500_s2, 32  ;;  %s328_s28 = int_to_ptr.hbm [resolvable:$true] %s327_s28 }
  0x20   : > { %vm148_vm4 = vcmp.lt.s32.totalorder %v127_v2, %v147_v8  ;;  %vm149_vm6 = vcmp.lt.s32.totalorder %v128_v6, %v147_v8  ;;  %s329_s29 = scalar_lea.hbm %s328_s28, 16  ;;  %p334_p0 = scmp.lt.s32.totalorder %s328_s28, %s500_s2 }
  0x21   : > { %vm150_vm7 = vmand %vm144_vm2, %vm148_vm4  ;;  %p330_p11 = scmp.ne.s32.totalorder %s328_s28, %s329_s29  ;;  %p335_p1 = scmp.lt.s32.totalorder %s333_s5, %s329_s29 }
  0x22   : > { %vm160_vm8 = vmor %vm461_vm3, %vm150_vm7 }
  0x23   : > { %v162_v11 = vsel %vm160_vm8, 0.0, %v152_v9  ;;  %vm151_vm9 = vmand %vm145_vm5, %vm149_vm6  ;;  %p331_p12 = pnand %p330_p11, %p438_p5  ;;  %p336_p2 = por %p335_p1, %p334_p0 }
  0x24   : > { %164 = vst [vmem:[%s118_s0] sm:$0xff] %v162_v11  ;;  %vm161_vm10 = vmor %vm461_vm3, %vm151_vm9 }
  0x25   : > { %v163_v12 = vsel %vm161_vm10, 0.0, %v153_v10  ;;  %p332_p13 = pneg %p331_p12 }
  0x26   : > { %165 = vst [vmem:[%s118_s0 + $0x8] sm:$0xff] %v163_v12 }
  0x27   : > { %p337_p3 = pnand %p336_p2, %p332_p13 }
  0x29   : > { %340 = shalt.err (!%p337_p3)
}
  0x2a   : > { %s380_s3 = smov 128   ;;  %s381_s8 = smov 8  }
  0x2b   : > { %259 = dma.vmem_to_hbm [thread:$0]  (%p438_p5), %s180_s25, 256, %s182_s26, %s167_s27, %s380_s3, %s380_s3, %s381_s8  }
  0x2c PF: > { %p265_p4 = scmp.ge.s32.totalorder %s377_s16, 2  ;;  %s196_s9 = sand.u32 1, %s365_s13  }
  0x2d   : > { %s197_s10 = scalar_lea.sflag [#allocation5], %s196_s9 }
  0x2e   : > { %p262_p7 = pnand %p265_p4, %p442_p6 }
  0x30   : > { %p263_p8 = pneg %p262_p7 }
  0x32   : > { %360 = dma.done.wait (%p263_p8), %s197_s10, 256  }
  0x33   : > { %362 = vsyncadd (%p263_p8), %s197_s10, 4294967040  ;;  %p20_p9 = scmp.ge.s32.totalorder %s425_s18, 4   ;;  %s505_s13 = smov %s369_s14 }
  0x34   : > { %s506_s14 = smov %s373_s15  ;;  %s507_s15 = smov %s436_s21 }
  0x35   : > { %s508_s16 = smov %s425_s18  ;;  %22 = sbr.rel (!%p20_p9) target bundleno = 9 (0x9), region = 59 }
  0x3a   :  { %203 = vsyncpa [#allocation5], 1 }
  0x3b   :  { %205 = vsyncpa [#allocation5 + $0x1], 1 }

</bundles_post_ra>
